<compile_context>
chip_gen: v5e
topology: v5e:2x2
jax: 0.10.0
libtpu: 0.0.40
codegen_flags: <defaults>
</compile_context>

<pallas_src>
import math

import jax
import jax.numpy as jnp
from jax.experimental import pallas as pl
from jax.experimental.pallas import tpu as pltpu


def ncf_kernel(
    ug_ref,    # (T, F)   user GMF embedding tile        (embed dtype)
    ig_ref,    # (T, F)   item GMF embedding tile        (embed dtype)
    um_ref,    # (T, F)   user MLP embedding tile        (embed dtype)
    im_ref,    # (T, F)   item MLP embedding tile        (embed dtype)
    w1u_ref,   # (F, 64)  user half of W1^T              (f32, VMEM resident)
    w1i_ref,   # (F, 64)  item half of W1^T              (f32, VMEM resident)
    b1_ref,    # (1, 64)
    w2_ref,    # (64, 32)
    b2_ref,    # (1, 32)
    w3_ref,    # (32, 16)
    b3_ref,    # (1, 16)
    wog_ref,   # (8, F)   output weights, GMF part (row 0 real, rows 1-7 zero)
    wom_ref,   # (8, 16)  output weights, MLP part (row 0 real, rows 1-7 zero)
    bo_ref,    # (1, 1)   output bias, SMEM scalar
    out_ref,   # (1, T)   lane-dense sigmoid outputs for this batch tile
):
    f32 = jnp.float32

    # GMF branch: element-wise product (VPU), in f32 on every chip generation.
    gmf = ug_ref[...].astype(f32) * ig_ref[...].astype(f32)            # (T, F)

    # MLP branch: Linear -> ReLU (x3).  Dropout is identity at inference.
    # concat([u, i]) @ W1^T == u @ W1u + i @ W1i  (no in-HBM concat needed).
    h = (
        jnp.dot(um_ref[...].astype(f32), w1u_ref[...], preferred_element_type=f32)
        + jnp.dot(im_ref[...].astype(f32), w1i_ref[...], preferred_element_type=f32)
        + b1_ref[...]
    )
    h = jnp.maximum(h, 0.0)                                            # (T, 64)
    h = jnp.maximum(
        jnp.dot(h, w2_ref[...], preferred_element_type=f32) + b2_ref[...], 0.0
    )                                                                  # (T, 32)
    h = jnp.maximum(
        jnp.dot(h, w3_ref[...], preferred_element_type=f32) + b3_ref[...], 0.0
    )                                                                  # (T, 16)

    # Output layer on concat([gmf, h]), expressed as a split projection and
    # computed in the transposed orientation so the logits come out lane-dense
    # as (1, T) rather than a masked (T, 1) column.  Rows 1..7 of wog/wom are
    # zero, so only row 0 of the (8, T) result is meaningful.
    trans_b = (((1,), (1,)), ((), ()))   # contract last dims: A @ B^T
    logits8 = (
        jax.lax.dot_general(wog_ref[...], gmf, trans_b, preferred_element_type=f32)
        + jax.lax.dot_general(wom_ref[...], h, trans_b, preferred_element_type=f32)
    )                                                                  # (8, T)
    logits = logits8[0:1, :] + bo_ref[0, 0]                            # (1, T)
    out_ref[...] = jax.nn.sigmoid(logits)


def _round_up(x, m):
    return (x + m - 1) // m * m


def ncf_forward(params, user_id, item_id, *, embed_dtype=jnp.bfloat16, tile_b=512):
    """Embedding gathers + parameter prep in plain JAX, hot path in Pallas."""
    B = int(user_id.shape[0])
    F = int(params["user_gmf_emb"].shape[1])

    # Batch tile: one step for small batches (block shape == full array, so the
    # (8,128) divisibility rule is satisfied trivially); otherwise `tile_b`
    # rows.  512 is a multiple of 128 lanes for the output slab and of 16
    # sublanes for bf16 inputs, and ~0.5 MiB double-buffered -> far under every
    # chip's scoped-VMEM limit (incl. v7x's 64 MiB physical VMEM).
    if B <= tile_b:
        tile = _round_up(max(B, 1), 16)   # 16-sublane friendly for bf16 packing
        b_pad = tile
    else:
        tile = tile_b
        b_pad = _round_up(B, tile)
    grid = (b_pad // tile,)

    # Pad ids (index 0 is always a valid row); padded rows are sliced off at
    # the end.
    pad = b_pad - B
    uid = jnp.pad(user_id, (0, pad))
    iid = jnp.pad(item_id, (0, pad))

    # Gathers stay in XLA; ship the gathered activations to the kernel in
    # `embed_dtype` (bf16 by default -> halves the dominant HBM traffic; the
    # kernel upcasts to f32 before any VPU/EUP work, which keeps v5e happy).
    u_gmf = jnp.take(params["user_gmf_emb"], uid, axis=0).astype(embed_dtype)
    i_gmf = jnp.take(params["item_gmf_emb"], iid, axis=0).astype(embed_dtype)
    u_mlp = jnp.take(params["user_mlp_emb"], uid, axis=0).astype(embed_dtype)
    i_mlp = jnp.take(params["item_mlp_emb"], iid, axis=0).astype(embed_dtype)

    # PyTorch Linear stores (out, in); pre-transpose to (in, out).  Split W1
    # into user/item halves so no (B, 2F) concat is materialized, and split the
    # output layer into GMF / MLP halves zero-padded to 8 rows for the
    # transposed (lane-dense) projection matmul.
    w1t = params["w1"].T                       # (2F, 64)
    w1u, w1i = w1t[:F], w1t[F:]
    w2 = params["w2"].T                        # (64, 32)
    w3 = params["w3"].T                        # (32, 16)
    b1 = params["b1"][None, :]
    b2 = params["b2"][None, :]
    b3 = params["b3"][None, :]
    wo = params["wo"]                          # (1, F + 16)
    wog8 = jnp.zeros((8, F), jnp.float32).at[0].set(wo[0, :F])
    wom8 = jnp.zeros((8, wo.shape[1] - F), jnp.float32).at[0].set(wo[0, F:])
    bo = params["bo"].reshape(1, 1)

    batch_spec = pl.BlockSpec((tile, F), lambda i: (i, 0))

    def resident(arr):
        # Same block every grid step -> stays VMEM-resident (no re-DMA).
        return pl.BlockSpec(arr.shape, lambda i: (0, 0))

    inputs = (u_gmf, i_gmf, u_mlp, i_mlp, w1u, w1i, b1, w2, b2, w3, b3, wog8, wom8, bo)

    l1, l2, l3 = w1u.shape[1], w2.shape[1], w3.shape[1]
    flops = 2 * b_pad * (2 * F * l1 + l1 * l2 + l2 * l3 + F + l3) + b_pad * F
    bytes_accessed = (
        sum(int(math.prod(a.shape)) * a.dtype.itemsize for a in inputs) + b_pad * 4
    )

    out = pl.pallas_call(
        ncf_kernel,
        out_shape=jax.ShapeDtypeStruct((1, b_pad), jnp.float32),
        grid=grid,
        in_specs=[
            batch_spec, batch_spec, batch_spec, batch_spec,
            resident(w1u), resident(w1i), resident(b1),
            resident(w2), resident(b2),
            resident(w3), resident(b3),
            resident(wog8), resident(wom8),
            pl.BlockSpec(memory_space=pltpu.MemorySpace.SMEM),   # scalar bias
        ],
        out_specs=pl.BlockSpec((1, tile), lambda i: (0, i)),     # lane-dense slab
        compiler_params=pltpu.CompilerParams(
            dimension_semantics=("parallel",),
            vmem_limit_bytes=32 * 1024 * 1024,
        ),
        cost_estimate=pl.CostEstimate(
            flops=int(flops),
            transcendentals=int(b_pad),
            bytes_accessed=int(bytes_accessed),
        ),
    )(*inputs)

    return out[0, :B]


def xavier_uniform(key, out_features, in_features):
    bound = math.sqrt(6.0 / (in_features + out_features))
    return jax.random.uniform(
        key, (out_features, in_features), jnp.float32, -bound, bound
    )


def init_params(key, n_users, n_items, factors=32, mlp_layers=(64, 32, 16)):
    # Parameters kept in f32 to match the PyTorch module; a production
    # deployment could store the embedding tables in bf16 directly.
    keys = jax.random.split(key, 9)
    params = {
        "user_gmf_emb": 0.01 * jax.random.normal(keys[0], (n_users, factors), jnp.float32),
        "item_gmf_emb": 0.01 * jax.random.normal(keys[1], (n_items, factors), jnp.float32),
        "user_mlp_emb": 0.01 * jax.random.normal(keys[2], (n_users, factors), jnp.float32),
        "item_mlp_emb": 0.01 * jax.random.normal(keys[3], (n_items, factors), jnp.float32),
    }
    in_size = 2 * factors
    for li, (k, out_size) in enumerate(zip(keys[4:7], mlp_layers), start=1):
        params[f"w{li}"] = xavier_uniform(k, out_size, in_size)
        params[f"b{li}"] = jnp.zeros((out_size,), jnp.float32)
        in_size = out_size
    params["wo"] = xavier_uniform(keys[7], 1, factors + mlp_layers[-1])
    params["bo"] = jnp.zeros((1,), jnp.float32)
    return params


def ncf_reference(params, user_id, item_id):
    """Pure-JAX f32 reference (mirrors the PyTorch forward) for correctness."""
    u_gmf = params["user_gmf_emb"][user_id]
    i_gmf = params["item_gmf_emb"][item_id]
    gmf = u_gmf * i_gmf
    x = jnp.concatenate(
        [params["user_mlp_emb"][user_id], params["item_mlp_emb"][item_id]], axis=1
    )
    for li in (1, 2, 3):
        x = jnp.maximum(x @ params[f"w{li}"].T + params[f"b{li}"], 0.0)
    cat = jnp.concatenate([gmf, x], axis=1)
    return jnp.squeeze(jax.nn.sigmoid(cat @ params["wo"].T + params["bo"]))


if __name__ == "__main__":
    key = jax.random.PRNGKey(0)
    k_param = jax.random.fold_in(key, 0)

    n_users, n_items, factors = 100, 200, 32
    params = init_params(k_param, n_users, n_items, factors=factors)

    # Small single-tile batch and a multi-tile batch (exercises grid + padding).
    for batch in (8, 600):
        k_user, k_item = jax.random.split(jax.random.fold_in(key, batch))
        user_id = jax.random.randint(k_user, (batch,), 0, n_users, dtype=jnp.int32)
        item_id = jax.random.randint(k_item, (batch,), 0, n_items, dtype=jnp.int32)

        ref = jax.block_until_ready(ncf_reference(params, user_id, item_id))

        # Exact f32 activation path: must match the reference tightly.
        out_f32 = jax.block_until_ready(
            ncf_forward(params, user_id, item_id, embed_dtype=jnp.float32)
        )
        assert out_f32.shape == (batch,), out_f32.shape
        assert jnp.allclose(out_f32, ref, atol=1e-5, rtol=1e-5), (out_f32, ref)

        # Default bf16 activation path (halved HBM traffic): loose tolerance.
        out_bf16 = jax.block_until_ready(ncf_forward(params, user_id, item_id))
        assert out_bf16.shape == (batch,), out_bf16.shape
        assert jnp.allclose(out_bf16, ref, atol=2e-2, rtol=2e-2), (out_bf16, ref)

    print("KERNEL_OK")
</pallas_src>

<mosaic_0001>
module attributes {stable_mosaic.version = 11 : i64} {
  func.func @ncf_kernel(%arg0: i32, %arg1: memref<16x32xf32, #tpu.memory_space<vmem>>, %arg2: memref<16x32xf32, #tpu.memory_space<vmem>>, %arg3: memref<16x32xf32, #tpu.memory_space<vmem>>, %arg4: memref<16x32xf32, #tpu.memory_space<vmem>>, %arg5: memref<32x64xf32, #tpu.memory_space<vmem>>, %arg6: memref<32x64xf32, #tpu.memory_space<vmem>>, %arg7: memref<1x64xf32, #tpu.memory_space<vmem>>, %arg8: memref<64x32xf32, #tpu.memory_space<vmem>>, %arg9: memref<1x32xf32, #tpu.memory_space<vmem>>, %arg10: memref<32x16xf32, #tpu.memory_space<vmem>>, %arg11: memref<1x16xf32, #tpu.memory_space<vmem>>, %arg12: memref<8x32xf32, #tpu.memory_space<vmem>>, %arg13: memref<8x16xf32, #tpu.memory_space<vmem>>, %arg14: memref<1x1xf32, #tpu.memory_space<smem>>, %arg15: memref<1x16xf32, #tpu.memory_space<vmem>>) attributes {dimension_semantics = [#tpu.dimension_semantics<parallel>], iteration_bounds = array<i64: 1>, scalar_prefetch = 0 : i64, scratch_operands = 0 : i64, tpu.core_type = #tpu.core_type<tc>, window_params = [{transform_indices = @transform_0, window_bounds = array<i64: 16, 32>}, {transform_indices = @transform_1, window_bounds = array<i64: 16, 32>}, {transform_indices = @transform_2, window_bounds = array<i64: 16, 32>}, {transform_indices = @transform_3, window_bounds = array<i64: 16, 32>}, {pipeline_mode = #tpu.pipeline_mode<synchronous>, transform_indices = @transform_4, window_bounds = array<i64: 32, 64>}, {pipeline_mode = #tpu.pipeline_mode<synchronous>, transform_indices = @transform_5, window_bounds = array<i64: 32, 64>}, {pipeline_mode = #tpu.pipeline_mode<synchronous>, transform_indices = @transform_6, window_bounds = array<i64: 1, 64>}, {pipeline_mode = #tpu.pipeline_mode<synchronous>, transform_indices = @transform_7, window_bounds = array<i64: 64, 32>}, {pipeline_mode = #tpu.pipeline_mode<synchronous>, transform_indices = @transform_8, window_bounds = array<i64: 1, 32>}, {pipeline_mode = #tpu.pipeline_mode<synchronous>, transform_indices = @transform_9, window_bounds = array<i64: 32, 16>}, {pipeline_mode = #tpu.pipeline_mode<synchronous>, transform_indices = @transform_10, window_bounds = array<i64: 1, 16>}, {pipeline_mode = #tpu.pipeline_mode<synchronous>, transform_indices = @transform_11, window_bounds = array<i64: 8, 32>}, {pipeline_mode = #tpu.pipeline_mode<synchronous>, transform_indices = @transform_12, window_bounds = array<i64: 8, 16>}, {transform_indices = @transform_13, window_bounds = array<i64: 1, 1>}, {transform_indices = @transform_14, window_bounds = array<i64: 1, 16>}]} {
    %c0 = arith.constant 0 : index
    %c0_0 = arith.constant 0 : index
    %0 = vector.load %arg1[%c0, %c0_0] : memref<16x32xf32, #tpu.memory_space<vmem>>, vector<16x32xf32>
    %c0_1 = arith.constant 0 : index
    %c0_2 = arith.constant 0 : index
    %1 = vector.load %arg2[%c0_1, %c0_2] : memref<16x32xf32, #tpu.memory_space<vmem>>, vector<16x32xf32>
    %2 = arith.mulf %0, %1 : vector<16x32xf32>
    %c0_3 = arith.constant 0 : index
    %c0_4 = arith.constant 0 : index
    %3 = vector.load %arg3[%c0_3, %c0_4] : memref<16x32xf32, #tpu.memory_space<vmem>>, vector<16x32xf32>
    %c0_5 = arith.constant 0 : index
    %c0_6 = arith.constant 0 : index
    %4 = vector.load %arg5[%c0_5, %c0_6] : memref<32x64xf32, #tpu.memory_space<vmem>>, vector<32x64xf32>
    %cst = arith.constant dense<0.000000e+00> : vector<16x64xf32>
    %5 = tpu.matmul %3, %4, %cst {dimension_numbers = #tpu.dot_dimension_numbers<[1], [0], [0], [1], [0, 0, 1, 1], [], []>} : vector<16x32xf32>, vector<32x64xf32>, vector<16x64xf32> -> vector<16x64xf32>
    %c0_7 = arith.constant 0 : index
    %c0_8 = arith.constant 0 : index
    %6 = vector.load %arg4[%c0_7, %c0_8] : memref<16x32xf32, #tpu.memory_space<vmem>>, vector<16x32xf32>
    %c0_9 = arith.constant 0 : index
    %c0_10 = arith.constant 0 : index
    %7 = vector.load %arg6[%c0_9, %c0_10] : memref<32x64xf32, #tpu.memory_space<vmem>>, vector<32x64xf32>
    %cst_11 = arith.constant dense<0.000000e+00> : vector<16x64xf32>
    %8 = tpu.matmul %6, %7, %cst_11 {dimension_numbers = #tpu.dot_dimension_numbers<[1], [0], [0], [1], [0, 0, 1, 1], [], []>} : vector<16x32xf32>, vector<32x64xf32>, vector<16x64xf32> -> vector<16x64xf32>
    %9 = arith.addf %5, %8 : vector<16x64xf32>
    %c0_12 = arith.constant 0 : index
    %c0_13 = arith.constant 0 : index
    %10 = vector.load %arg7[%c0_12, %c0_13] : memref<1x64xf32, #tpu.memory_space<vmem>>, vector<1x64xf32>
    %11 = vector.broadcast %10 : vector<1x64xf32> to vector<16x64xf32>
    %12 = arith.addf %9, %11 : vector<16x64xf32>
    %cst_14 = arith.constant 0.000000e+00 : f32
    %13 = vector.broadcast %cst_14 : f32 to vector<16x64xf32>
    %14 = arith.maximumf %12, %13 : vector<16x64xf32>
    %c0_15 = arith.constant 0 : index
    %c0_16 = arith.constant 0 : index
    %15 = vector.load %arg8[%c0_15, %c0_16] : memref<64x32xf32, #tpu.memory_space<vmem>>, vector<64x32xf32>
    %cst_17 = arith.constant dense<0.000000e+00> : vector<16x32xf32>
    %16 = tpu.matmul %14, %15, %cst_17 {dimension_numbers = #tpu.dot_dimension_numbers<[1], [0], [0], [1], [0, 0, 1, 1], [], []>} : vector<16x64xf32>, vector<64x32xf32>, vector<16x32xf32> -> vector<16x32xf32>
    %c0_18 = arith.constant 0 : index
    %c0_19 = arith.constant 0 : index
    %17 = vector.load %arg9[%c0_18, %c0_19] : memref<1x32xf32, #tpu.memory_space<vmem>>, vector<1x32xf32>
    %18 = vector.broadcast %17 : vector<1x32xf32> to vector<16x32xf32>
    %19 = arith.addf %16, %18 : vector<16x32xf32>
    %cst_20 = arith.constant 0.000000e+00 : f32
    %20 = vector.broadcast %cst_20 : f32 to vector<16x32xf32>
    %21 = arith.maximumf %19, %20 : vector<16x32xf32>
    %c0_21 = arith.constant 0 : index
    %c0_22 = arith.constant 0 : index
    %22 = vector.load %arg10[%c0_21, %c0_22] : memref<32x16xf32, #tpu.memory_space<vmem>>, vector<32x16xf32>
    %cst_23 = arith.constant dense<0.000000e+00> : vector<16x16xf32>
    %23 = tpu.matmul %21, %22, %cst_23 {dimension_numbers = #tpu.dot_dimension_numbers<[1], [0], [0], [1], [0, 0, 1, 1], [], []>} : vector<16x32xf32>, vector<32x16xf32>, vector<16x16xf32> -> vector<16x16xf32>
    %c0_24 = arith.constant 0 : index
    %c0_25 = arith.constant 0 : index
    %24 = vector.load %arg11[%c0_24, %c0_25] : memref<1x16xf32, #tpu.memory_space<vmem>>, vector<1x16xf32>
    %25 = vector.broadcast %24 : vector<1x16xf32> to vector<16x16xf32>
    %26 = arith.addf %23, %25 : vector<16x16xf32>
    %cst_26 = arith.constant 0.000000e+00 : f32
    %27 = vector.broadcast %cst_26 : f32 to vector<16x16xf32>
    %28 = arith.maximumf %26, %27 : vector<16x16xf32>
    %c0_27 = arith.constant 0 : index
    %c0_28 = arith.constant 0 : index
    %29 = vector.load %arg12[%c0_27, %c0_28] : memref<8x32xf32, #tpu.memory_space<vmem>>, vector<8x32xf32>
    %cst_29 = arith.constant dense<0.000000e+00> : vector<8x16xf32>
    %30 = tpu.matmul %29, %2, %cst_29 {dimension_numbers = #tpu.dot_dimension_numbers<[1], [1], [0], [0], [0, 0, 1, 0], [], []>} : vector<8x32xf32>, vector<16x32xf32>, vector<8x16xf32> -> vector<8x16xf32>
    %c0_30 = arith.constant 0 : index
    %c0_31 = arith.constant 0 : index
    %31 = vector.load %arg13[%c0_30, %c0_31] : memref<8x16xf32, #tpu.memory_space<vmem>>, vector<8x16xf32>
    %cst_32 = arith.constant dense<0.000000e+00> : vector<8x16xf32>
    %32 = tpu.matmul %31, %28, %cst_32 {dimension_numbers = #tpu.dot_dimension_numbers<[1], [1], [0], [0], [0, 0, 1, 0], [], []>} : vector<8x16xf32>, vector<16x16xf32>, vector<8x16xf32> -> vector<8x16xf32>
    %33 = arith.addf %30, %32 : vector<8x16xf32>
    %34 = vector.extract_strided_slice %33 {offsets = [0, 0], sizes = [1, 16], strides = [1, 1]} : vector<8x16xf32> to vector<1x16xf32>
    %c0_33 = arith.constant 0 : index
    %c0_34 = arith.constant 0 : index
    %35 = memref.load %arg14[%c0_33, %c0_34] : memref<1x1xf32, #tpu.memory_space<smem>>
    %36 = vector.broadcast %35 : f32 to vector<1x16xf32>
    %37 = arith.addf %34, %36 : vector<1x16xf32>
    %38 = arith.negf %37 : vector<1x16xf32>
    %39 = math.exp %38 : vector<1x16xf32>
    %cst_35 = arith.constant 1.000000e+00 : f32
    %40 = vector.broadcast %cst_35 : f32 to vector<1x16xf32>
    %41 = arith.addf %40, %39 : vector<1x16xf32>
    %42 = arith.divf %40, %41 : vector<1x16xf32>
    %c0_36 = arith.constant 0 : index
    %c0_37 = arith.constant 0 : index
    %43 = vector.load %arg15[%c0_36, %c0_37] : memref<1x16xf32, #tpu.memory_space<vmem>>, vector<1x16xf32>
    tpu.vector_store %arg15[%c0_36, %c0_37], %42 {strides = array<i32>} : memref<1x16xf32, #tpu.memory_space<vmem>>, vector<1x16xf32>,
    return
  }
  func.func @transform_0(%arg0: i32) -> (i32, i32) {
    %c0_i32 = arith.constant 0 : i32
    %c0_i32_0 = arith.constant 0 : i32
    return %arg0, %c0_i32 : i32, i32
  }
  func.func @transform_1(%arg0: i32) -> (i32, i32) {
    %c0_i32 = arith.constant 0 : i32
    %c0_i32_0 = arith.constant 0 : i32
    return %arg0, %c0_i32 : i32, i32
  }
  func.func @transform_2(%arg0: i32) -> (i32, i32) {
    %c0_i32 = arith.constant 0 : i32
    %c0_i32_0 = arith.constant 0 : i32
    return %arg0, %c0_i32 : i32, i32
  }
  func.func @transform_3(%arg0: i32) -> (i32, i32) {
    %c0_i32 = arith.constant 0 : i32
    %c0_i32_0 = arith.constant 0 : i32
    return %arg0, %c0_i32 : i32, i32
  }
  func.func @transform_4(%arg0: i32) -> (i32, i32) {
    %c0_i32 = arith.constant 0 : i32
    %c0_i32_0 = arith.constant 0 : i32
    %c0_i32_1 = arith.constant 0 : i32
    return %c0_i32, %c0_i32_0 : i32, i32
  }
  func.func @transform_5(%arg0: i32) -> (i32, i32) {
    %c0_i32 = arith.constant 0 : i32
    %c0_i32_0 = arith.constant 0 : i32
    %c0_i32_1 = arith.constant 0 : i32
    return %c0_i32, %c0_i32_0 : i32, i32
  }
  func.func @transform_6(%arg0: i32) -> (i32, i32) {
    %c0_i32 = arith.constant 0 : i32
    %c0_i32_0 = arith.constant 0 : i32
    %c0_i32_1 = arith.constant 0 : i32
    return %c0_i32, %c0_i32_0 : i32, i32
  }
  func.func @transform_7(%arg0: i32) -> (i32, i32) {
    %c0_i32 = arith.constant 0 : i32
    %c0_i32_0 = arith.constant 0 : i32
    %c0_i32_1 = arith.constant 0 : i32
    return %c0_i32, %c0_i32_0 : i32, i32
  }
  func.func @transform_8(%arg0: i32) -> (i32, i32) {
    %c0_i32 = arith.constant 0 : i32
    %c0_i32_0 = arith.constant 0 : i32
    %c0_i32_1 = arith.constant 0 : i32
    return %c0_i32, %c0_i32_0 : i32, i32
  }
  func.func @transform_9(%arg0: i32) -> (i32, i32) {
    %c0_i32 = arith.constant 0 : i32
    %c0_i32_0 = arith.constant 0 : i32
    %c0_i32_1 = arith.constant 0 : i32
    return %c0_i32, %c0_i32_0 : i32, i32
  }
  func.func @transform_10(%arg0: i32) -> (i32, i32) {
    %c0_i32 = arith.constant 0 : i32
    %c0_i32_0 = arith.constant 0 : i32
    %c0_i32_1 = arith.constant 0 : i32
    return %c0_i32, %c0_i32_0 : i32, i32
  }
  func.func @transform_11(%arg0: i32) -> (i32, i32) {
    %c0_i32 = arith.constant 0 : i32
    %c0_i32_0 = arith.constant 0 : i32
    %c0_i32_1 = arith.constant 0 : i32
    return %c0_i32, %c0_i32_0 : i32, i32
  }
  func.func @transform_12(%arg0: i32) -> (i32, i32) {
    %c0_i32 = arith.constant 0 : i32
    %c0_i32_0 = arith.constant 0 : i32
    %c0_i32_1 = arith.constant 0 : i32
    return %c0_i32, %c0_i32_0 : i32, i32
  }
  func.func @transform_13(%arg0: i32) -> (i32, i32) {
    %c0_i32 = arith.constant 0 : i32
    %c0_i32_0 = arith.constant 0 : i32
    %c0_i32_1 = arith.constant 0 : i32
    return %c0_i32, %c0_i32_0 : i32, i32
  }
  func.func @transform_14(%arg0: i32) -> (i32, i32) {
    %c0_i32 = arith.constant 0 : i32
    %c0_i32_0 = arith.constant 0 : i32
    return %c0_i32, %arg0 : i32, i32
  }
}

</mosaic_0001>

<bundles_post_ra>
// kernel: tpu_custom_call.1
= control target key start
LH: loop header
LB: loop body
LE: loop exit
PB: predicated region body
PF: predicated region fallthrough
CT: control target
= control target key end

     0   :  { %20 = vsyncpa [#allocation4], 0  ;;  %s685_s0 = inlined_call_operand.vmem [shape: f32[16,32], index: 0, kind: input, shape index: {}]   ;;  %s686_s1 = inlined_call_operand.vmem [shape: f32[16,32], index: 1, kind: input, shape index: {}]   ;;  %s687_s2 = inlined_call_operand.vmem [shape: f32[16,32], index: 2, kind: input, shape index: {}]   ;;  %s688_s3 = inlined_call_operand.hbm [shape: f32[16,32], index: 3, kind: input, shape index: {}]   ;;  %s689_s4 = inlined_call_operand.vmem [shape: f32[32,64], index: 4, kind: input, shape index: {}]   ;;  %s690_s5 = inlined_call_operand.vmem [shape: f32[32,64], index: 5, kind: input, shape index: {}]   ;;  %s691_s6 = inlined_call_operand.hbm [shape: f32[1,64], index: 6, kind: input, shape index: {}]   ;;  %s692_s7 = inlined_call_operand.vmem [shape: f32[64,32], index: 7, kind: input, shape index: {}]   ;;  %s693_s8 = inlined_call_operand.vmem [shape: f32[1,32], index: 8, kind: input, shape index: {}]   ;;  %s694_s9 = inlined_call_operand.vmem [shape: f32[32,16], index: 9, kind: input, shape index: {}]   ;;  %s695_s10 = inlined_call_operand.vmem [shape: f32[1,16], index: 10, kind: input, shape index: {}]   ;;  %s696_s11 = inlined_call_operand.vmem [shape: f32[8,32], index: 11, kind: input, shape index: {}]   ;;  %s697_s12 = inlined_call_operand.hbm [shape: f32[8,16], index: 12, kind: input, shape index: {}]   ;;  %s698_s13 = inlined_call_operand.<no memory space> [shape: f32[1,1], index: 13, kind: input, shape index: {}]   ;;  %s699_s14 = inlined_call_operand.hbm [shape: f32[1,16], index: 14, kind: output, shape index: {}]  }
   0x1   :  { %21 = vsyncpa [#allocation7], 0  ;;  %s51_s15 = sshll.u32 %s691_s6, 4  ;;  %s52_s15 = int_to_ptr.hbm [resolvable:$true] %s51_s15 }
   0x2   :  { %22 = vsyncpa [#allocation5], 0  ;;  %s493_s16 = smov [#allocation6]   ;;  %s33_s20 = sshll.u32 %s688_s3, 4  ;;  %s34_s20 = int_to_ptr.hbm [resolvable:$true] %s33_s20 }
   0x3   :  { %s53_s17 = sshll.u32 %s493_s16, 4  ;;  %s494_s21 = smov [#allocation3]   ;;  %s54_s17 = int_to_ptr.vmem [resolvable:$true] %s53_s17 }
   0x4   :  { %56 = dma.hbm_to_vmem [thread:$0]  %s52_s15, 16, %s54_s17, [#allocation7]  }
   0x5   :  { %s35_s22 = sshll.u32 %s494_s21, 4  ;;  %s495_s23 = smov 128   ;;  %s36_s22 = int_to_ptr.vmem [resolvable:$true] %s35_s22 }
   0x6   :  { %s496_s24 = smov 8   ;;  %s72_s6 = sshll.u32 %s697_s12, 4  ;;  %s73_s6 = int_to_ptr.hbm [resolvable:$true] %s72_s6 }
   0x7   :  { %41 = dma.hbm_to_vmem [thread:$0]  %s34_s20, 256, %s36_s22, [#allocation4], %s495_s23, %s495_s23, %s496_s24  }
   0x8   :  { %s497_s27 = smov [#allocation8]  }
   0x9   :  { %s74_s28 = sshll.u32 %s497_s27, 4  ;;  %s75_s28 = int_to_ptr.vmem [resolvable:$true] %s74_s28 }
   0xa   :  { %77 = dma.hbm_to_vmem [thread:$0]  %s73_s6, 128, %s75_s28, [#allocation7]  }
   0xb   :  { %487 = dma.done.wait [#allocation4], 256  }
   0xc   :  { %488 = vsyncadd [#allocation4], 4294967040 }
   0xd   :  { %489 = dma.done.wait [#allocation7], 144  }
   0xe   :  { %490 = vsyncadd [#allocation7], 4294967152  ;;  %v109_v0 = vld [vmem:[%s690_s5 + $0x18] sm:$0xff]  ;;  %v108_v2 = vld [vmem:[%s690_s5 + $0x10] sm:$0xff]  ;;  %vm110_vm0 = vcmask 261120   ;;  %vm189_vm1 = vcmask 523264   ;;  %v322_v59 = vstv %s698_s13 }
   0xf   :  { %v103_v1 = vld [vmem:[%s689_s4 + $0x18] sm:$0xff]  ;;  %129 = vmatpush.msra.mxu0 %v109_v0  ;;  %v102_v3 = vld [vmem:[%s689_s4 + $0x10] sm:$0xff]  ;;  %v107_v4 = vld [vmem:[%s690_s5 + $0x8] sm:$0xff]  ;;  %vm262_vm2 = vcmask 130048   ;;  %s352_s13 = sshll.u32 %s699_s14, 4  ;;  %vm343_vm6 = vcmask 122880   ;;  %s353_s13 = int_to_ptr.hbm [resolvable:$true] %s352_s13 }
  0x10   :  { %158 = vmatpush.msra.mxu1 %v103_v1  ;;  %v101_v5 = vld [vmem:[%s689_s4 + $0x8] sm:$0xff]  ;;  %v106_v6 = vld [vmem:[%s690_s5] sm:$0xff]  ;;  %v184_v9 = vld [vmem:[%s692_s7 + $0x38] sm:$0xff] }
  0x11   :  { %130 = vmatpush.msra.mxu0 %v108_v2  ;;  %v100_v7 = vld [vmem:[%s689_s4] sm:$0xff]  ;;  %204 = vmatpush.msra.mxu2 %v184_v9  ;;  %v183_v11 = vld [vmem:[%s692_s7 + $0x30] sm:$0xff]  ;;  %v182_v12 = vld [vmem:[%s692_s7 + $0x28] sm:$0xff] }
  0x12   :  { %159 = vmatpush.msra.mxu1 %v102_v3  ;;  %v104_v8 = vld [vmem:[#allocation3] sm:$0xff]  ;;  %v105_v14 = vld [vmem:[#allocation3 + $0x8] sm:$0xff]  ;;  %v180_v16 = vld [vmem:[%s692_s7 + $0x18] sm:$0xff] }
  0x13   :  { %131 = vmatpush.msra.mxu0 %v107_v4  ;;  %v98_v10 = vld [vmem:[%s687_s2] sm:$0xff]  ;;  %205 = vmatpush.msra.mxu2 %v183_v11  ;;  %v99_v15 = vld [vmem:[%s687_s2 + $0x8] sm:$0xff]  ;;  %v179_v17 = vld [vmem:[%s692_s7 + $0x10] sm:$0xff] }
  0x14   :  { %160 = vmatpush.msra.mxu1 %v101_v5  ;;  %v181_v13 = vld [vmem:[%s692_s7 + $0x20] sm:$0xff]  ;;  %v178_v18 = vld [vmem:[%s692_s7 + $0x8] sm:$0xff]  ;;  %v224_v20 = vld [vmem:[%s694_s9 + $0x18] sm:$0xff] }
  0x15   :  { %132 = vmatpush.msra.mxu0 %v106_v6  ;;  %206 = vmatpush.msra.mxu2 %v182_v12  ;;  %v177_v19 = vld [vmem:[%s692_s7] sm:$0xff]  ;;  %v384_v21 = vld [vmem:[#allocation6] ss:$0 sm:$0xff]  ;;  %v222_v33 = vld [vmem:[%s694_s9 + $0x8] sm:$0xff] }
  0x16   :  { %161 = vmatpush.msra.mxu1 %v100_v7  ;;  %363 = vmatmul.msk.f32.vlgmr.msra.gmra.mxu0 %vm110_vm0, %v104_v8  ;;  %v223_v32 = vld [vmem:[%s694_s9 + $0x10] sm:$0xff]  ;;  %v221_v34 = vld [vmem:[%s694_s9] sm:$0xff]  ;;  %v93_v42 = vld [vmem:[%s685_s0 + $0x8] sm:$0xff] }
  0x17   :  { %365 = vmatmul.msk.f32.vlgmr.msra.gmra.mxu1 %vm110_vm0, %v98_v10  ;;  %207 = vmatpush.msra.mxu2 %v181_v13  ;;  %v385_v35 = vld [vmem:[%s693_s8] ss:$0 sm:$0xff]  ;;  %v95_v43 = vld [vmem:[%s686_s1 + $0x8] sm:$0xff]  ;;  %v261_v56 = vld [vmem:[#allocation8] sm:$0xff] }
  0x18   :  { %247 = vmatpush.msra.mxu3 %v224_v20  ;;  %v97_v44 = vmul.f32 %v95_v43, %v93_v42  ;;  %v92_v45 = vld [vmem:[%s685_s0] sm:$0xff] }
  0x19   :  { %208 = vmatpush.msra.mxu2 %v180_v16  ;;  %v94_v46 = vld [vmem:[%s686_s1] sm:$0xff] }
  0x1a   :  { %248 = vmatpush.msra.mxu3 %v223_v32  ;;  %374 = vmatpush.xpose.msk.msrb.mxu1 %vm110_vm0, %v97_v44  ;;  %v96_v47 = vmul.f32 %v94_v46, %v92_v45  ;;  %v260_v48 = vld [vmem:[%s696_s11] sm:$0xff] }
  0x1b   :  { %209 = vmatpush.msra.mxu2 %v179_v17  ;;  %v386_v50 = vld [vmem:[%s695_s10] ss:$0 sm:$0xff]  ;;  %s498_s10 = smov [#allocation9]  }
  0x1c   :  { %249 = vmatpush.msra.mxu3 %v222_v33  ;;  %s350_s11 = sshll.u32 %s498_s10, 4  ;;  %s351_s11 = int_to_ptr.vmem [resolvable:$true] %s350_s11 }
  0x1d   :  { %210 = vmatpush.msra.mxu2 %v178_v18 }
  0x1e   :  { %364 = vmatmul.msk.f32.gmra.mxu0 %vm110_vm0, %v105_v14  ;;  %250 = vmatpush.msra.mxu3 %v221_v34 }
  0x1f   :  { %366 = vmatmul.msk.f32.gmra.mxu1 %vm110_vm0, %v99_v15  ;;  %211 = vmatpush.msra.mxu2 %v177_v19 }
  0x20   :  { %375 = vmatpush.xpose.msk.msrb.mxu1 %vm110_vm0, %v96_v47 }
  0x27   :  { %376 = vmatmul.msk.f32.vlgmr.msrb.gmra.mxu1 %vm110_vm0, %v260_v48 }
  0x93   :  { %v134_v22 = vpop.f32.mrf.mxu0 }
  0x94   :  { %v163_v23 = vpop.f32.mrf.mxu1 }
  0x95   :  { %v164_v24 = vadd.f32 %v163_v23, %v134_v22 }
  0x97   :  { %v173_v25 = vadd.f32 %v384_v21, %v164_v24 }
  0x99   :  { %v175_v26 = vmax.f32 %v173_v25, 0.0 }
  0x9b   :  { %367 = vmatmul.msk.f32.vlgmr.msra.gmra.mxu2 %vm189_vm1, %v175_v26  ;;  %v137_v27 = vpop.f32.mrf.mxu0 }
  0x9c   :  { %v166_v28 = vpop.f32.mrf.mxu1 }
  0x9d   :  { %v167_v29 = vadd.f32 %v166_v28, %v137_v27 }
  0x9f   :  { %v174_v30 = vadd.f32 %v384_v21, %v167_v29 }
  0xa1   :  { %v176_v31 = vmax.f32 %v174_v30, 0.0 }
  0xa3   :  { %368 = vmatmul.msk.f32.gmra.mxu2 %vm189_vm1, %v176_v31 }
  0xa4   :  { %v318_v57 = vpop.f32.mrf.mxu1 }
 0x11e   :  { %v213_v36 = vpop.f32.mrf.mxu2 }
 0x11f   :  { %v214_v37 = vadd.f32 %v385_v35, %v213_v36 }
 0x121   :  { %v219_v38 = vmax.f32 %v214_v37, 0.0 }
 0x123   :  { %369 = vmatmul.msk.f32.vlgmr.msra.gmra.mxu3 %vm110_vm0, %v219_v38 }
 0x126   :  { %v216_v39 = vpop.f32.mrf.mxu2 }
 0x127   :  { %v217_v40 = vadd.f32 %v385_v35, %v216_v39 }
 0x129   :  { %v220_v41 = vmax.f32 %v217_v40, 0.0 }
 0x12b   :  { %370 = vmatmul.msk.f32.gmra.mxu3 %vm110_vm0, %v220_v41 }
 0x1a6   :  { %v252_v49 = vpop.f32.mrf.mxu3 }
 0x1a7   :  { %v253_v53 = vadd.f32 %v386_v50, %v252_v49 }
 0x1a9   :  { %v258_v55 = vmax.f32 %v253_v53, 0.0 }
 0x1ae   :  { %v255_v51 = vpop.f32.mrf.mxu3 }
 0x1af   :  { %v256_v52 = vadd.f32 %v386_v50, %v255_v51 }
 0x1b1   :  { %v259_v54 = vmax.f32 %v256_v52, 0.0 }
 0x1b3   :  { %371 = vmatpush.xpose.msk.msrb.mxu0 %vm262_vm2, %v259_v54 }
 0x1b7   :  { %372 = vmatpush.xpose.msk.msrb.mxu0 %vm262_vm2, %v258_v55 }
 0x1ba   :  { %373 = vmatmul.msk.f32.vlgmr.msrb.gmra.mxu0 %vm262_vm2, %v261_v56 }
 0x237   :  { %v289_v58 = vpop.f32.mrf.mxu0 }
 0x238   :  { %v319_v60 = vadd.f32 %v318_v57, %v289_v58 }
 0x23a   :  { %v323_v61 = vadd.f32 %v322_v59, %v319_v60 }
 0x23c   :  { %v377_v62 = vmul.f32 -1.442695, %v323_v61 }
 0x23e   :  { %387 = vpow2.f32 %v377_v62 }
 0x244   :  { %v388_v63 = vpop.eup %387 }
 0x245   :  { %v327_v0 = vadd.f32 1.0, %v388_v63 }
 0x247   :  { %389 = vrcp.f32 %v327_v0  ;;  %v339_v4 = vand.u32 2147483648, %v327_v0  ;;  %v337_v6 = vand.u32 2147483647, %v327_v0  ;;  %vm333_vm4 = vweird.f32 %v327_v0 }
 0x249   :  { %v340_v8 = vor.u32 1.1754944e-38, %v339_v4  ;;  %vm338_vm7 = vcmp.eq.f32.partialorder %v337_v6, 8.507059e+37 }
 0x24d   :  { %v390_v1 = vpop.eup %389 }
 0x24e   :  { %v329_v2 = vmul.f32 %v390_v1, %v327_v0  ;;  %vm334_vm3 = vweird.f32 %v390_v1 }
 0x24f   :  { %vm335_vm5 = vmor %vm333_vm4, %vm334_vm3 }
 0x250   :  { %v330_v3 = vsub.f32 1.0, %v329_v2 }
 0x252   :  { %v331_v5 = vmul.f32 %v390_v1, %v330_v3 }
 0x254   :  { %v332_v7 = vadd.f32 %v390_v1, %v331_v5 }
 0x256   :  { %v336_v9 = vsel %vm335_vm5, %v390_v1, %v332_v7 }
 0x257   :  { %v341_v10 = vsel %vm338_vm7, %v340_v8, %v336_v9 }
 0x258   :  { %344 = vst.msk [vmem:[#allocation9] sm:$0x1] %vm343_vm6, %v341_v10 }
 0x259   :  { %355 = dma.vmem_to_hbm [thread:$0]  %s351_s11, 16, %s353_s13, [#allocation5]  }
 0x25a   :  { %491 = dma.done.wait [#allocation5], 16  }
 0x25b   :  { %492 = vsyncadd [#allocation5], 4294967280 }
 0x25c   :  { %360 = vsyncpa [#allocation4], 1 }
 0x25d   :  { %361 = vsyncpa [#allocation7], 1 }
 0x25e   :  { %362 = vsyncpa [#allocation5], 1 }

</bundles_post_ra>
